<compile_context>
chip_gen: v6e
topology: v6e:2x2x1
jax: 0.10.0
libtpu: 0.0.40
codegen_flags: <defaults>
</compile_context>

<pallas_src>
import functools

import jax
import jax.numpy as jnp
from jax.experimental import pallas as pl
from jax.experimental.pallas import tpu as pltpu


def _default_matmul_dtype():
    """bf16 operands on bf16-native MXUs (v6e / v7x), f32 otherwise."""
    try:
        kind = jax.devices()[0].device_kind.lower()
    except Exception:
        return jnp.float32
    if "v5" in kind:                       # v5e/v5p: keep f32 operands
        return jnp.float32
    if "v6" in kind or "v7" in kind or "tpu7" in kind:
        return jnp.bfloat16
    return jnp.float32


def _dropout(v, keep_prob):
    """Inverted dropout (training path only).

    Compares raw uint32 PRNG bits against an integer threshold; the 1/keep_prob
    scale is a hoisted constant.
    TODO(synk): training-mode mask cannot bit-match torch's RNG stream, and it
    depends on the batch_tile choice via the per-tile seed offset.
    """
    if keep_prob >= 1.0:
        return v
    bits = pltpu.bitcast(pltpu.prng_random_bits(v.shape), jnp.uint32)
    threshold = jnp.uint32(min(int(keep_prob * (1 << 32)), (1 << 32) - 1))
    scale = jnp.float32(1.0 / keep_prob)
    return jnp.where(bits < threshold, v * scale, jnp.zeros_like(v))


def dae_kernel(seed_ref,
               x_ref,
               w1_ref, b1_ref,   # encoder 1: D0 -> D1
               w2_ref, b2_ref,   # encoder 2: D1 -> D2
               w3_ref, b3_ref,   # decoder (reversed): D2 -> D1
               w4_ref, b4_ref,   # decoder (reversed): D1 -> D0
               o_ref,
               *, keep_prob, train, matmul_dtype):
    if train:
        pltpu.prng_seed(seed_ref[0] + pl.program_id(0))

    def mm(a, w_ref, b_ref):
        # MXU matmul with `matmul_dtype` operands, f32 accumulate;
        # bias-add (and downstream ReLU) stay in f32.
        return jnp.dot(a.astype(matmul_dtype),
                       w_ref[...].astype(matmul_dtype),
                       preferred_element_type=jnp.float32) + b_ref[...]

    x = x_ref[...].astype(jnp.float32)

    # ---- encode: Linear -> ReLU -> Dropout -> Linear -> ReLU ----
    h = jnp.maximum(mm(x, w1_ref, b1_ref), 0.0)
    if train:
        h = _dropout(h, keep_prob)
    h = jnp.maximum(mm(h, w2_ref, b2_ref), 0.0)

    # ---- decode: (ReLU no-op elided) -> Linear -> Dropout -> ReLU -> Linear ----
    d = mm(h, w3_ref, b3_ref)
    if train:
        d = _dropout(d, keep_prob)
    d = jnp.maximum(d, 0.0)
    out = mm(d, w4_ref, b4_ref)

    o_ref[...] = out.astype(o_ref.dtype)


def dropout_dae_forward(x, params, *, seed=0, train=False, keep_prob=0.9,
                        batch_tile=256, matmul_dtype=None):
    """Full DAE forward in one fused Pallas kernel.

    x: (B, D0) float32.  params: dict of pre-transposed weights (in, out) and
    biases (1, out).
    """
    B, D0 = x.shape
    if matmul_dtype is None:
        matmul_dtype = _default_matmul_dtype()
    batch_tile = min(batch_tile, B)
    assert B % batch_tile == 0, (B, batch_tile)

    seed_arr = jnp.asarray([seed], dtype=jnp.int32)

    # Weights / biases: whole array resident in VMEM once — no per-grid-step
    # DMA, no double-buffered second copy.
    vmem_full = pl.BlockSpec(memory_space=pltpu.MemorySpace.VMEM)

    kernel = functools.partial(dae_kernel, keep_prob=keep_prob, train=train,
                               matmul_dtype=matmul_dtype)

    return pl.pallas_call(
        kernel,
        out_shape=jax.ShapeDtypeStruct((B, D0), x.dtype),
        grid=(B // batch_tile,),
        in_specs=[
            pl.BlockSpec(memory_space=pltpu.MemorySpace.SMEM),   # seed
            pl.BlockSpec((batch_tile, D0), lambda i: (i, 0)),    # x tile
            vmem_full, vmem_full,                                # w1, b1
            vmem_full, vmem_full,                                # w2, b2
            vmem_full, vmem_full,                                # w3, b3
            vmem_full, vmem_full,                                # w4, b4
        ],
        out_specs=pl.BlockSpec((batch_tile, D0), lambda i: (i, 0)),
        compiler_params=pltpu.CompilerParams(
            dimension_semantics=("parallel",)),
    )(seed_arr, x,
      params["w1"], params["b1"], params["w2"], params["b2"],
      params["w3"], params["b3"], params["w4"], params["b4"])


def _torch_linear_init(key, fan_in, fan_out):
    """PyTorch nn.Linear default init: U(-1/sqrt(fan_in), 1/sqrt(fan_in)).

    Weight returned already transposed to (in, out); bias as (1, out).
    """
    kw, kb = jax.random.split(key)
    bound = 1.0 / jnp.sqrt(jnp.float32(fan_in))
    w = jax.random.uniform(kw, (fan_in, fan_out), jnp.float32, -bound, bound)
    b = jax.random.uniform(kb, (1, fan_out), jnp.float32, -bound, bound)
    return w, b


def make_params(layers, key):
    """layers = [D0, D1, D2]; builds encoder + (reversed) decoder weights."""
    D0, D1, D2 = layers
    k1, k2, k3, k4 = jax.random.split(key, 4)
    w1, b1 = _torch_linear_init(k1, D0, D1)   # encoder Linear(D0, D1)
    w2, b2 = _torch_linear_init(k2, D1, D2)   # encoder Linear(D1, D2)
    w3, b3 = _torch_linear_init(k3, D2, D1)   # decoder Linear(D2, D1)
    w4, b4 = _torch_linear_init(k4, D1, D0)   # decoder Linear(D1, D0)
    return dict(w1=w1, b1=b1, w2=w2, b2=b2, w3=w3, b3=b3, w4=w4, b4=b4)


def reference_forward(x, p, matmul_dtype=jnp.float32):
    """Pure-JAX (eval-mode) reference using the same operand dtype."""
    def mm(a, w, b):
        return jnp.dot(a.astype(matmul_dtype), w.astype(matmul_dtype),
                       preferred_element_type=jnp.float32) + b
    h = jnp.maximum(mm(x, p["w1"], p["b1"]), 0.0)
    h = jnp.maximum(mm(h, p["w2"], p["b2"]), 0.0)
    d = jnp.maximum(mm(h, p["w3"], p["b3"]), 0.0)
    return mm(d, p["w4"], p["b4"])


if __name__ == "__main__":
    layers = [128, 64, 32]      # DAE layer widths [D0, D1, D2]
    batch = 512                 # 2 grid steps of 256 rows -> keeps both v7x TCs busy
    batch_tile = 256

    key = jax.random.PRNGKey(0)
    kx, kp = jax.random.split(key)
    x = jax.random.normal(kx, (batch, layers[0]), dtype=jnp.float32)
    params = make_params(layers, kp)

    matmul_dtype = _default_matmul_dtype()

    out = dropout_dae_forward(x, params, train=False, batch_tile=batch_tile,
                              matmul_dtype=matmul_dtype)
    out = jax.block_until_ready(out)

    ref = reference_forward(x, params, matmul_dtype=matmul_dtype)
    assert out.shape == (batch, layers[0])
    tol = 1e-5 if matmul_dtype == jnp.float32 else 1e-3
    assert jnp.allclose(out, ref, atol=tol, rtol=tol), \
        float(jnp.max(jnp.abs(out - ref)))

    print("KERNEL_OK")
</pallas_src>

<mosaic_0001>
module attributes {stable_mosaic.version = 11 : i64} {
  func.func @dae_kernel(%arg0: i32, %arg1: memref<1xi32, #tpu.memory_space<smem>>, %arg2: memref<256x128xf32, #tpu.memory_space<vmem>>, %arg3: memref<128x64xf32, #tpu.memory_space<vmem>>, %arg4: memref<1x64xf32, #tpu.memory_space<vmem>>, %arg5: memref<64x32xf32, #tpu.memory_space<vmem>>, %arg6: memref<1x32xf32, #tpu.memory_space<vmem>>, %arg7: memref<32x64xf32, #tpu.memory_space<vmem>>, %arg8: memref<1x64xf32, #tpu.memory_space<vmem>>, %arg9: memref<64x128xf32, #tpu.memory_space<vmem>>, %arg10: memref<1x128xf32, #tpu.memory_space<vmem>>, %arg11: memref<256x128xf32, #tpu.memory_space<vmem>>) attributes {dimension_semantics = [#tpu.dimension_semantics<parallel>], iteration_bounds = array<i64: 2>, scalar_prefetch = 0 : i64, scratch_operands = 0 : i64, tpu.core_type = #tpu.core_type<tc>, window_params = [{transform_indices = @transform_0, window_bounds = array<i64: 1>}, {transform_indices = @transform_1, window_bounds = array<i64: 256, 128>}, {pipeline_mode = #tpu.pipeline_mode<synchronous>, transform_indices = @transform_2, window_bounds = array<i64: 128, 64>}, {pipeline_mode = #tpu.pipeline_mode<synchronous>, transform_indices = @transform_3, window_bounds = array<i64: 1, 64>}, {pipeline_mode = #tpu.pipeline_mode<synchronous>, transform_indices = @transform_4, window_bounds = array<i64: 64, 32>}, {pipeline_mode = #tpu.pipeline_mode<synchronous>, transform_indices = @transform_5, window_bounds = array<i64: 1, 32>}, {pipeline_mode = #tpu.pipeline_mode<synchronous>, transform_indices = @transform_6, window_bounds = array<i64: 32, 64>}, {pipeline_mode = #tpu.pipeline_mode<synchronous>, transform_indices = @transform_7, window_bounds = array<i64: 1, 64>}, {pipeline_mode = #tpu.pipeline_mode<synchronous>, transform_indices = @transform_8, window_bounds = array<i64: 64, 128>}, {pipeline_mode = #tpu.pipeline_mode<synchronous>, transform_indices = @transform_9, window_bounds = array<i64: 1, 128>}, {transform_indices = @transform_10, window_bounds = array<i64: 256, 128>}]} {
    %c0 = arith.constant 0 : index
    %c0_0 = arith.constant 0 : index
    %0 = vector.load %arg2[%c0, %c0_0] : memref<256x128xf32, #tpu.memory_space<vmem>>, vector<256x128xf32>
    %c0_1 = arith.constant 0 : index
    %c0_2 = arith.constant 0 : index
    %1 = vector.load %arg3[%c0_1, %c0_2] : memref<128x64xf32, #tpu.memory_space<vmem>>, vector<128x64xf32>
    %cst = arith.constant dense<0.000000e+00> : vector<256x64xf32>
    %2 = tpu.matmul %0, %1, %cst {dimension_numbers = #tpu.dot_dimension_numbers<[1], [0], [0], [1], [0, 0, 1, 1], [], []>} : vector<256x128xf32>, vector<128x64xf32>, vector<256x64xf32> -> vector<256x64xf32>
    %c0_3 = arith.constant 0 : index
    %c0_4 = arith.constant 0 : index
    %3 = vector.load %arg4[%c0_3, %c0_4] : memref<1x64xf32, #tpu.memory_space<vmem>>, vector<1x64xf32>
    %4 = vector.broadcast %3 : vector<1x64xf32> to vector<256x64xf32>
    %5 = arith.addf %2, %4 : vector<256x64xf32>
    %cst_5 = arith.constant 0.000000e+00 : f32
    %6 = vector.broadcast %cst_5 : f32 to vector<256x64xf32>
    %7 = arith.maximumf %5, %6 : vector<256x64xf32>
    %c0_6 = arith.constant 0 : index
    %c0_7 = arith.constant 0 : index
    %8 = vector.load %arg5[%c0_6, %c0_7] : memref<64x32xf32, #tpu.memory_space<vmem>>, vector<64x32xf32>
    %cst_8 = arith.constant dense<0.000000e+00> : vector<256x32xf32>
    %9 = tpu.matmul %7, %8, %cst_8 {dimension_numbers = #tpu.dot_dimension_numbers<[1], [0], [0], [1], [0, 0, 1, 1], [], []>} : vector<256x64xf32>, vector<64x32xf32>, vector<256x32xf32> -> vector<256x32xf32>
    %c0_9 = arith.constant 0 : index
    %c0_10 = arith.constant 0 : index
    %10 = vector.load %arg6[%c0_9, %c0_10] : memref<1x32xf32, #tpu.memory_space<vmem>>, vector<1x32xf32>
    %11 = vector.broadcast %10 : vector<1x32xf32> to vector<256x32xf32>
    %12 = arith.addf %9, %11 : vector<256x32xf32>
    %cst_11 = arith.constant 0.000000e+00 : f32
    %13 = vector.broadcast %cst_11 : f32 to vector<256x32xf32>
    %14 = arith.maximumf %12, %13 : vector<256x32xf32>
    %c0_12 = arith.constant 0 : index
    %c0_13 = arith.constant 0 : index
    %15 = vector.load %arg7[%c0_12, %c0_13] : memref<32x64xf32, #tpu.memory_space<vmem>>, vector<32x64xf32>
    %cst_14 = arith.constant dense<0.000000e+00> : vector<256x64xf32>
    %16 = tpu.matmul %14, %15, %cst_14 {dimension_numbers = #tpu.dot_dimension_numbers<[1], [0], [0], [1], [0, 0, 1, 1], [], []>} : vector<256x32xf32>, vector<32x64xf32>, vector<256x64xf32> -> vector<256x64xf32>
    %c0_15 = arith.constant 0 : index
    %c0_16 = arith.constant 0 : index
    %17 = vector.load %arg8[%c0_15, %c0_16] : memref<1x64xf32, #tpu.memory_space<vmem>>, vector<1x64xf32>
    %18 = vector.broadcast %17 : vector<1x64xf32> to vector<256x64xf32>
    %19 = arith.addf %16, %18 : vector<256x64xf32>
    %cst_17 = arith.constant 0.000000e+00 : f32
    %20 = vector.broadcast %cst_17 : f32 to vector<256x64xf32>
    %21 = arith.maximumf %19, %20 : vector<256x64xf32>
    %c0_18 = arith.constant 0 : index
    %c0_19 = arith.constant 0 : index
    %22 = vector.load %arg9[%c0_18, %c0_19] : memref<64x128xf32, #tpu.memory_space<vmem>>, vector<64x128xf32>
    %cst_20 = arith.constant dense<0.000000e+00> : vector<256x128xf32>
    %23 = tpu.matmul %21, %22, %cst_20 {dimension_numbers = #tpu.dot_dimension_numbers<[1], [0], [0], [1], [0, 0, 1, 1], [], []>} : vector<256x64xf32>, vector<64x128xf32>, vector<256x128xf32> -> vector<256x128xf32>
    %c0_21 = arith.constant 0 : index
    %c0_22 = arith.constant 0 : index
    %24 = vector.load %arg10[%c0_21, %c0_22] : memref<1x128xf32, #tpu.memory_space<vmem>>, vector<1x128xf32>
    %25 = vector.broadcast %24 : vector<1x128xf32> to vector<256x128xf32>
    %26 = arith.addf %23, %25 : vector<256x128xf32>
    %c0_23 = arith.constant 0 : index
    %c0_24 = arith.constant 0 : index
    %27 = vector.load %arg11[%c0_23, %c0_24] : memref<256x128xf32, #tpu.memory_space<vmem>>, vector<256x128xf32>
    tpu.vector_store %arg11[%c0_23, %c0_24], %26 {strides = array<i32>} : memref<256x128xf32, #tpu.memory_space<vmem>>, vector<256x128xf32>,
    return
  }
  func.func @transform_0(%arg0: i32) -> i32 {
    %c0_i32 = arith.constant 0 : i32
    %c0_i32_0 = arith.constant 0 : i32
    return %c0_i32 : i32
  }
  func.func @transform_1(%arg0: i32) -> (i32, i32) {
    %c0_i32 = arith.constant 0 : i32
    %c0_i32_0 = arith.constant 0 : i32
    return %arg0, %c0_i32 : i32, i32
  }
  func.func @transform_2(%arg0: i32) -> (i32, i32) {
    %c0_i32 = arith.constant 0 : i32
    %c0_i32_0 = arith.constant 0 : i32
    %c0_i32_1 = arith.constant 0 : i32
    return %c0_i32, %c0_i32_0 : i32, i32
  }
  func.func @transform_3(%arg0: i32) -> (i32, i32) {
    %c0_i32 = arith.constant 0 : i32
    %c0_i32_0 = arith.constant 0 : i32
    %c0_i32_1 = arith.constant 0 : i32
    return %c0_i32, %c0_i32_0 : i32, i32
  }
  func.func @transform_4(%arg0: i32) -> (i32, i32) {
    %c0_i32 = arith.constant 0 : i32
    %c0_i32_0 = arith.constant 0 : i32
    %c0_i32_1 = arith.constant 0 : i32
    return %c0_i32, %c0_i32_0 : i32, i32
  }
  func.func @transform_5(%arg0: i32) -> (i32, i32) {
    %c0_i32 = arith.constant 0 : i32
    %c0_i32_0 = arith.constant 0 : i32
    %c0_i32_1 = arith.constant 0 : i32
    return %c0_i32, %c0_i32_0 : i32, i32
  }
  func.func @transform_6(%arg0: i32) -> (i32, i32) {
    %c0_i32 = arith.constant 0 : i32
    %c0_i32_0 = arith.constant 0 : i32
    %c0_i32_1 = arith.constant 0 : i32
    return %c0_i32, %c0_i32_0 : i32, i32
  }
  func.func @transform_7(%arg0: i32) -> (i32, i32) {
    %c0_i32 = arith.constant 0 : i32
    %c0_i32_0 = arith.constant 0 : i32
    %c0_i32_1 = arith.constant 0 : i32
    return %c0_i32, %c0_i32_0 : i32, i32
  }
  func.func @transform_8(%arg0: i32) -> (i32, i32) {
    %c0_i32 = arith.constant 0 : i32
    %c0_i32_0 = arith.constant 0 : i32
    %c0_i32_1 = arith.constant 0 : i32
    return %c0_i32, %c0_i32_0 : i32, i32
  }
  func.func @transform_9(%arg0: i32) -> (i32, i32) {
    %c0_i32 = arith.constant 0 : i32
    %c0_i32_0 = arith.constant 0 : i32
    %c0_i32_1 = arith.constant 0 : i32
    return %c0_i32, %c0_i32_0 : i32, i32
  }
  func.func @transform_10(%arg0: i32) -> (i32, i32) {
    %c0_i32 = arith.constant 0 : i32
    %c0_i32_0 = arith.constant 0 : i32
    return %arg0, %c0_i32 : i32, i32
  }
}

</mosaic_0001>

<bundles_post_ra>
// kernel: tpu_custom_call.1
= control target key start
LH: loop header
LB: loop body
LE: loop exit
PB: predicated region body
PF: predicated region fallthrough
CT: control target
= control target key end

     0   :  { %16 = vsyncpa [#allocation4], 0  ;;  %s3226_s0 = inlined_call_operand.<no memory space> [shape: s32[1], index: 0, kind: input, shape index: {}]   ;;  %s3227_s1 = inlined_call_operand.hbm [shape: f32[512,128], index: 1, kind: input, shape index: {}]   ;;  %s3228_s2 = inlined_call_operand.vmem [shape: f32[128,64], index: 2, kind: input, shape index: {}]   ;;  %s3229_s3 = inlined_call_operand.vmem [shape: f32[1,64], index: 3, kind: input, shape index: {}]   ;;  %s3230_s4 = inlined_call_operand.vmem [shape: f32[64,32], index: 4, kind: input, shape index: {}]   ;;  %s3231_s5 = inlined_call_operand.vmem [shape: f32[1,32], index: 5, kind: input, shape index: {}]   ;;  %s3232_s6 = inlined_call_operand.vmem [shape: f32[32,64], index: 6, kind: input, shape index: {}]   ;;  %s3233_s7 = inlined_call_operand.vmem [shape: f32[1,64], index: 7, kind: input, shape index: {}]   ;;  %s3234_s8 = inlined_call_operand.vmem [shape: f32[64,128], index: 8, kind: input, shape index: {}]   ;;  %s3235_s9 = inlined_call_operand.vmem [shape: f32[1,128], index: 9, kind: input, shape index: {}]   ;;  %s3236_s10 = inlined_call_operand.hbm [shape: f32[512,128], index: 10, kind: output, shape index: {}]  }
   0x1   :  { %18 = vsyncpa [#allocation4 + $0x1], 0 }
   0x2   :  { %19 = vsyncpa [#allocation5], 0 }
   0x3   :  { %21 = vsyncpa [#allocation5 + $0x1], 0  ;;  %s2647_s12 = smov 0   ;;  %s2649_s13 = smov 0  }
   0x4   :  { %s2651_s14 = smov 0   ;;  %s2653_s15 = smov 0  }
   0x5 LB: > { %3240 = sst [smem:[#allocation9_spill]] %s2580_s14  ;;  %s2668_s16 = sadd.s32 4294967295, %s2584_s15   ;;  %s2584_s15 = sphi %s2653_s15, %s3255_s15   ;;  %s2580_s14 = sphi %s2651_s14, %s3252_s14   ;;  %s2576_s13 = sphi %s2649_s13, %s3254_s13   ;;  %s2572_s12 = sphi %s2647_s12, %s3253_s12  }
   0x6   : > { %s1882_s17 = sadd.s32 4294967294, %s2584_s15   ;;  %s2672_s18 = sadd.s32 1, %s2584_s15  }
   0x7   : > { %s55_s19 = sadd.s32 1, %s2580_s14  ;;  %s52_s20 = ssub.s32 %s2584_s15, %s2672_s18 }
   0x8   : > { %p62_p0 = scmp.ne.s32.totalorder %s2580_s14, %s2576_s13  ;;  %p53_p1 = scmp.eq.s32.totalorder %s52_s20, 0 }
   0x9   : > { %p63_p2 = scmp.eq.s32.totalorder %s2584_s15, 0  ;;  %p68_p3 = scmp.ne.s32.totalorder %s2576_s13, %s2572_s12 }
   0xa   : > { %p69_p4 = scmp.eq.s32.totalorder %s2668_s16, 0  ;;  %p260_p7 = scmp.eq.s32.totalorder %s2668_s16, 1 }
   0xb   : > { %s2684_s21 = scalar_select %p53_p1, %s2580_s14, %s55_s19  }
   0xc   : > { %p2686_p5 = por %p63_p2, %p62_p0  ;;  %p2690_p6 = por %p69_p4, %p68_p3 }
   0xd   : > { %3241 = sst [smem:[#allocation10_spill]] %s2684_s21  ;;  %p266_p8 = scmp.eq.s32.totalorder %s1882_s17, 1 }
   0xe   : > { %s3243_s23 = scalar_select %p2690_p6, 1, 0 }
   0xf   : > { %p2454_p10 = scmp.lt.s32.totalorder %s2584_s15, 2  ;;  %p2697_p11 = por %p260_p7, %p62_p0 }
  0x10   : > { %p2701_p12 = por %p266_p8, %p68_p3  ;;  %s313_s0 = sand.u32 1, %s2580_s14  }
  0x11   : > { %s3244_s24 = scalar_select %p2697_p11, 1, 0 }
  0x12   : > { %s3245_s25 = scalar_select %p2701_p12, 1, 0 }
  0x13   : > { %s1996_s26 = sshll.u32 %s2584_s15, 12  ;;  %s1885_s27 = sshll.u32 %s313_s0, 8 }
  0x14   : > { %s2710_s30 = scalar_lea.hbm %s3227_s1, %s1996_s26  ;;  %s317_s11 = scalar_lea.vmem [#allocation3], %s1885_s27 }
  0x15   : > { %s324_s17 = sshll.u32 %s317_s11, 4  ;;  %p2714_p13 = pnand %p2454_p10, %p2686_p5  ;;  %s2718_s17 = int_to_ptr.vmem [resolvable:$true] %s324_s17 }
  0x16   : > { %s2720_s20 = scalar_lea.sflag [#allocation4], %s313_s0  ;;  %s2492_s21 = scalar_lea.hbm %s2710_s30, 4096 }
  0x17   : > { %p2493_p0 = scmp.ne.s32.totalorder %s2710_s30, %s2492_s21  ;;  %p2494_p1 = pneg %p2714_p13 }
  0x18   : > { %s2497_s27 = scalar_lea.hbm %s3227_s1, 8192  ;;  %p2498_p4 = scmp.lt.s32.totalorder %s2710_s30, %s3227_s1 }
  0x19   : > { %p2495_p2 = pnand %p2494_p1, %p2493_p0  ;;  %p2499_p5 = scmp.lt.s32.totalorder %s2497_s27, %s2492_s21 }
  0x1b   : > { %p2496_p3 = pneg %p2495_p2  ;;  %p2500_p7 = por %p2499_p5, %p2498_p4 }
  0x1d   : > { %p2501_p8 = pnand %p2500_p7, %p2496_p3 }
  0x1f   : > { %2504 = shalt.err (!%p2501_p8)
}
  0x20   : > { %s2505_s0 = scalar_lea.vmem %s2718_s17, 4096  ;;  %s2586_s11 = smov [#allocation3]  }
  0x21   : > { %p2506_p10 = scmp.ne.s32.totalorder %s2718_s17, %s2505_s0  ;;  %s2510_s14 = sshll.u32 %s2586_s11, 4  ;;  %s2511_s14 = int_to_ptr.vmem [resolvable:$false] %s2510_s14 }
  0x22   : > { %s2512_s26 = scalar_lea.vmem %s2511_s14, 8192  ;;  %p2513_p2 = scmp.lt.s32.totalorder %s2718_s17, %s2511_s14 }
  0x23   : > { %p2508_p9 = pnand %p2506_p10, %p2494_p1  ;;  %p2514_p12 = scmp.lt.s32.totalorder %s2512_s26, %s2505_s0 }
  0x25   : > { %p2509_p0 = pneg %p2508_p9  ;;  %p2515_p11 = por %p2514_p12, %p2513_p2 }
  0x27   : > { %p2516_p6 = pnand %p2515_p11, %p2509_p0 }
  0x29   : > { %2519 = shalt.err (!%p2516_p6)
}
  0x2a   : > { %s2587_s21 = smov 128   ;;  %s2588_s28 = smov 8  }
  0x2b   : > { %2449 = dma.hbm_to_vmem [thread:$0]  (!%p2714_p13), %s2710_s30, 4096, %s2718_s17, %s2720_s20, %s2587_s21, %s2587_s21, %s2588_s28  }
  0x2c   : > { %p1888_p9 = scmp.ge.s32.totalorder %s2584_s15, 1  ;;  %p332_p1 = scmp.lt.s32.totalorder %s2584_s15, 3 }
  0x2e   : > { %p333_p3 = pnand %p1888_p9, %p332_p1 }
  0x2f   : > { %s2744_s14 = sand.u32 (!%p333_p3), 1, %s2576_s13   ;;  %p3247_p6 = scmp.ne.s32.totalorder (!%p333_p3), %s3243_s23, 0 }
  0x30   : > { %336 = sbr.rel (%p333_p3) target bundleno = 958 (0x3be), region = 60  ;;  %s1889_s27 = sshll.u32 (!%p333_p3), %s2744_s14, 8 }
  0x31   : > { %s339_s22 = scalar_lea.sflag (!%p333_p3), [#allocation4], %s2744_s14  ;;  %s2750_s29 = scalar_lea.vmem (!%p333_p3), [#allocation3], %s1889_s27 }
  0x35   : > { %2563 = dma.done.wait (%p3247_p6), %s339_s22, 4096  }
  0x36   : > { %2565 = vsyncadd (%p3247_p6), %s339_s22, 4294963200  ;;  %v428_v0 = vld [vmem:[%s3228_s2 + $0x78] sm:$0xff]  ;;  %v427_v1 = vld [vmem:[%s3228_s2 + $0x70] sm:$0xff]  ;;  %vm708_vm0 = vcmask 523264   ;;  %vm1073_vm1 = vcmask 261120   ;;  %s3111_s30 = scalar_lea.vmem [#allocation6], %s1889_s27 }
  0x37   : > { %2162 = vmatprep.subr.mxu0 %v428_v0  ;;  %v426_v2 = vld [vmem:[%s3228_s2 + $0x68] sm:$0xff]  ;;  %v425_v3 = vld [vmem:[%s3228_s2 + $0x60] sm:$0xff]  ;;  %v424_v5 = vld [vmem:[%s3228_s2 + $0x58] sm:$0xff]  ;;  %s1997_s27 = sshll.u32 %s2668_s16, 12  ;;  %s1809_s17 = sshll.u32 %s3111_s30, 4  ;;  %s3180_s17 = int_to_ptr.vmem [resolvable:$true] %s1809_s17 }
  0x38   : > { %2163 = vmatpush3.msra.mxu0 %v428_v0  ;;  %v381_v4 = vld [vmem:[%s2750_s29] sm:$0xff]  ;;  %v423_v6 = vld [vmem:[%s3228_s2 + $0x50] sm:$0xff]  ;;  %v422_v7 = vld [vmem:[%s3228_s2 + $0x48] sm:$0xff]  ;;  %s3178_s20 = scalar_lea.hbm %s3236_s10, %s1997_s27  ;;  %s1796_s16 = scalar_lea.sflag [#allocation5], %s2744_s14 }
  0x39   : > { %2164 = vmatprep.subr.mxu0 %v427_v1  ;;  %2194 = vmatprep.mubr.f32.mxu0 %v381_v4  ;;  %v421_v8 = vld [vmem:[%s3228_s2 + $0x40] sm:$0xff]  ;;  %v420_v9 = vld [vmem:[%s3228_s2 + $0x38] sm:$0xff]  ;;  %v419_v10 = vld [vmem:[%s3228_s2 + $0x30] sm:$0xff]  ;;  %s2520_s0 = scalar_lea.vmem %s3180_s17, 4096  ;;  %p3248_p12 = scmp.ne.s32.totalorder %s3244_s24, 0 }
  0x3a   : > { %2165 = vmatpush3.msra.mxu0 %v427_v1  ;;  %v700_v11 = vld [vmem:[%s3230_s4 + $0x38] sm:$0xff]  ;;  %v699_v12 = vld [vmem:[%s3230_s4 + $0x30] sm:$0xff]  ;;  %v418_v13 = vld [vmem:[%s3228_s2 + $0x28] sm:$0xff]  ;;  %p2521_p11 = scmp.ne.s32.totalorder %s3180_s17, %s2520_s0  ;;  %s2589_s11 = smov [#allocation6]  }
  0x3b   : > { %2166 = vmatprep.subr.mxu0 %v426_v2  ;;  %2242 = vmatprep.subr.mxu1 %v700_v11  ;;  %v698_v14 = vld [vmem:[%s3230_s4 + $0x28] sm:$0xff]  ;;  %v417_v15 = vld [vmem:[%s3228_s2 + $0x20] sm:$0xff]  ;;  %v416_v17 = vld [vmem:[%s3228_s2 + $0x18] sm:$0xff]  ;;  %s2524_s26 = sshll.u32 %s2589_s11, 4  ;;  %s2525_s26 = int_to_ptr.vmem [resolvable:$false] %s2524_s26 }
  0x3c   : > { %2167 = vmatpush3.msra.mxu0 %v426_v2  ;;  %2243 = vmatpush3.msra.mxu1 %v700_v11  ;;  %v697_v16 = vld [vmem:[%s3230_s4 + $0x20] sm:$0xff]  ;;  %v415_v18 = vld [vmem:[%s3228_s2 + $0x10] sm:$0xff]  ;;  %v414_v19 = vld [vmem:[%s3228_s2 + $0x8] sm:$0xff]  ;;  %p2522_p13 = pnand %p2521_p11, %p3248_p12  ;;  %s2526_s23 = scalar_lea.vmem %s2525_s26, 8192 }
  0x3d   : > { %2168 = vmatprep.subr.mxu0 %v425_v3  ;;  %2244 = vmatprep.subr.mxu1 %v699_v12  ;;  %v413_v20 = vld [vmem:[%s3228_s2] sm:$0xff]  ;;  %v382_v21 = vld [vmem:[%s2750_s29 + $0x8] sm:$0xff]  ;;  %v383_v22 = vld [vmem:[%s2750_s29 + $0x10] sm:$0xff]  ;;  %p2527_p5 = scmp.lt.s32.totalorder %s3180_s17, %s2525_s26  ;;  %p2528_p7 = scmp.lt.s32.totalorder %s2526_s23, %s2520_s0 }
  0x3e   : > { %2169 = vmatpush3.msra.mxu0 %v425_v3  ;;  %2245 = vmatpush3.msra.mxu1 %v699_v12  ;;  %v384_v23 = vld [vmem:[%s2750_s29 + $0x18] sm:$0xff]  ;;  %v385_v24 = vld [vmem:[%s2750_s29 + $0x20] sm:$0xff]  ;;  %v386_v25 = vld [vmem:[%s2750_s29 + $0x28] sm:$0xff]  ;;  %p2523_p4 = pneg %p2522_p13 }
  0x3f   : > { %2170 = vmatprep.subr.mxu0 %v424_v5  ;;  %2246 = vmatprep.subr.mxu1 %v698_v14  ;;  %v387_v26 = vld [vmem:[%s2750_s29 + $0x30] sm:$0xff]  ;;  %v388_v27 = vld [vmem:[%s2750_s29 + $0x38] sm:$0xff]  ;;  %v389_v28 = vld [vmem:[%s2750_s29 + $0x40] sm:$0xff]  ;;  %p2529_p8 = por %p2528_p7, %p2527_p5 }
  0x40   : > { %2171 = vmatpush3.msra.mxu0 %v424_v5  ;;  %2247 = vmatpush3.msra.mxu1 %v698_v14  ;;  %v390_v29 = vld [vmem:[%s2750_s29 + $0x48] sm:$0xff]  ;;  %v391_v30 = vld [vmem:[%s2750_s29 + $0x50] sm:$0xff]  ;;  %v392_v31 = vld [vmem:[%s2750_s29 + $0x58] sm:$0xff] }
  0x41   : > { %2172 = vmatprep.subr.mxu0 %v423_v6  ;;  %2248 = vmatprep.subr.mxu1 %v697_v16  ;;  %v393_v32 = vld [vmem:[%s2750_s29 + $0x60] sm:$0xff]  ;;  %v394_v33 = vld [vmem:[%s2750_s29 + $0x68] sm:$0xff]  ;;  %v395_v34 = vld [vmem:[%s2750_s29 + $0x70] sm:$0xff]  ;;  %p2530_p10 = pnand %p2529_p8, %p2523_p4 }
  0x42   : > { %2173 = vmatpush3.msra.mxu0 %v423_v6  ;;  %2249 = vmatpush3.msra.mxu1 %v697_v16  ;;  %v396_v35 = vld [vmem:[%s2750_s29 + $0x78] sm:$0xff]  ;;  %v397_v36 = vld [vmem:[%s2750_s29 + $0x80] sm:$0xff]  ;;  %v398_v37 = vld [vmem:[%s2750_s29 + $0x88] sm:$0xff] }
  0x43   : > { %2174 = vmatprep.subr.mxu0 %v422_v7  ;;  %v399_v38 = vld [vmem:[%s2750_s29 + $0x90] sm:$0xff]  ;;  %v400_v39 = vld [vmem:[%s2750_s29 + $0x98] sm:$0xff]  ;;  %v401_v40 = vld [vmem:[%s2750_s29 + $0xa0] sm:$0xff] }
  0x44   : > { %2175 = vmatpush3.msra.mxu0 %v422_v7  ;;  %v402_v41 = vld [vmem:[%s2750_s29 + $0xa8] sm:$0xff]  ;;  %v403_v42 = vld [vmem:[%s2750_s29 + $0xb0] sm:$0xff]  ;;  %v404_v43 = vld [vmem:[%s2750_s29 + $0xb8] sm:$0xff] }
  0x45   : > { %2176 = vmatprep.subr.mxu0 %v421_v8  ;;  %v405_v44 = vld [vmem:[%s2750_s29 + $0xc0] sm:$0xff]  ;;  %v406_v45 = vld [vmem:[%s2750_s29 + $0xc8] sm:$0xff]  ;;  %v407_v46 = vld [vmem:[%s2750_s29 + $0xd0] sm:$0xff] }
  0x46   : > { %2177 = vmatpush3.msra.mxu0 %v421_v8  ;;  %v408_v47 = vld [vmem:[%s2750_s29 + $0xd8] sm:$0xff]  ;;  %v409_v48 = vld [vmem:[%s2750_s29 + $0xe0] sm:$0xff]  ;;  %v410_v49 = vld [vmem:[%s2750_s29 + $0xe8] sm:$0xff] }
  0x47   : > { %2178 = vmatprep.subr.mxu0 %v420_v9  ;;  %v411_v50 = vld [vmem:[%s2750_s29 + $0xf0] sm:$0xff]  ;;  %v412_v51 = vld [vmem:[%s2750_s29 + $0xf8] sm:$0xff]  ;;  %v694_v54 = vld [vmem:[%s3230_s4 + $0x8] sm:$0xff] }
  0x48   : > { %2179 = vmatpush3.msra.mxu0 %v420_v9  ;;  %v696_v52 = vld [vmem:[%s3230_s4 + $0x18] sm:$0xff]  ;;  %v695_v53 = vld [vmem:[%s3230_s4 + $0x10] sm:$0xff]  ;;  %v693_v55 = vld [vmem:[%s3230_s4] sm:$0xff] }
  0x49   : > { %2180 = vmatprep.subr.mxu0 %v419_v10  ;;  %2250 = vmatprep.subr.mxu1 %v696_v52  ;;  %v1065_v56 = vld [vmem:[%s3232_s6 + $0x18] sm:$0xff]  ;;  %v2866_v57 = vld [vmem:[%s3229_s3] ss:$0 sm:$0xff]  ;;  %v1064_v4 = vld [vmem:[%s3232_s6 + $0x10] sm:$0xff] }
  0x4a   : > { %2181 = vmatpush3.msra.mxu0 %v419_v10  ;;  %2251 = vmatpush3.msra.mxu1 %v696_v52  ;;  %v1063_v7 = vld [vmem:[%s3232_s6 + $0x8] sm:$0xff]  ;;  %v1062_v12 = vld [vmem:[%s3232_s6] sm:$0xff] }
  0x4b   : > { %2182 = vmatprep.subr.mxu0 %v418_v13  ;;  %2252 = vmatprep.subr.mxu1 %v695_v53 }
  0x4c   : > { %2183 = vmatpush3.msra.mxu0 %v418_v13  ;;  %2253 = vmatpush3.msra.mxu1 %v695_v53 }
  0x4d   : > { %2184 = vmatprep.subr.mxu0 %v417_v15  ;;  %2254 = vmatprep.subr.mxu1 %v694_v54 }
  0x4e   : > { %2185 = vmatpush3.msra.mxu0 %v417_v15  ;;  %2255 = vmatpush3.msra.mxu1 %v694_v54 }
  0x4f   : > { %2186 = vmatprep.subr.mxu0 %v416_v17  ;;  %2256 = vmatprep.subr.mxu1 %v693_v55 }
  0x50   : > { %2187 = vmatpush3.msra.mxu0 %v416_v17  ;;  %2257 = vmatpush3.msra.mxu1 %v693_v55 }
  0x51   : > { %2188 = vmatprep.subr.mxu0 %v415_v18  ;;  %2306 = vmatprep.subr.mxu1 %v1065_v56 }
  0x52   : > { %2189 = vmatpush3.msra.mxu0 %v415_v18 }
  0x53   : > { %2190 = vmatprep.subr.mxu0 %v414_v19 }
  0x54   : > { %2191 = vmatpush3.msra.mxu0 %v414_v19 }
  0x55   : > { %2192 = vmatprep.subr.mxu0 %v413_v20 }
  0x56   : > { %2193 = vmatpush3.msra.mxu0 %v413_v20 }
  0x57   : > { %2195 = vmatmul.mubr.f32.vlgmr.msra.gmra.mxu0 %v382_v21 }
  0x58   : > { %2197 = vmatprep.mubr.f32.mxu0 %v383_v22 }
  0x5b   : > { %2198 = vmatmul.mubr.f32.gmra.mxu0 %v384_v23 }
  0x5c   : > { %2200 = vmatprep.mubr.f32.mxu0 %v385_v24 }
  0x5f   : > { %2201 = vmatmul.mubr.f32.gmra.mxu0 %v386_v25 }
  0x60   : > { %2203 = vmatprep.mubr.f32.mxu0 %v387_v26 }
  0x63   : > { %2204 = vmatmul.mubr.f32.gmra.mxu0 %v388_v27 }
  0x64   : > { %2206 = vmatprep.mubr.f32.mxu0 %v389_v28 }
  0x67   : > { %2207 = vmatmul.mubr.f32.gmra.mxu0 %v390_v29 }
  0x68   : > { %2209 = vmatprep.mubr.f32.mxu0 %v391_v30 }
  0x6b   : > { %2210 = vmatmul.mubr.f32.gmra.mxu0 %v392_v31 }
  0x6c   : > { %2212 = vmatprep.mubr.f32.mxu0 %v393_v32 }
  0x6f   : > { %2213 = vmatmul.mubr.f32.gmra.mxu0 %v394_v33 }
  0x70   : > { %2215 = vmatprep.mubr.f32.mxu0 %v395_v34 }
  0x73   : > { %2216 = vmatmul.mubr.f32.gmra.mxu0 %v396_v35 }
  0x74   : > { %2218 = vmatprep.mubr.f32.mxu0 %v397_v36 }
  0x77   : > { %2219 = vmatmul.mubr.f32.gmra.mxu0 %v398_v37 }
  0x78   : > { %2221 = vmatprep.mubr.f32.mxu0 %v399_v38 }
  0x7b   : > { %2222 = vmatmul.mubr.f32.gmra.mxu0 %v400_v39 }
  0x7c   : > { %2224 = vmatprep.mubr.f32.mxu0 %v401_v40 }
  0x7f   : > { %2225 = vmatmul.mubr.f32.gmra.mxu0 %v402_v41 }
  0x80   : > { %2227 = vmatprep.mubr.f32.mxu0 %v403_v42 }
  0x83   : > { %2228 = vmatmul.mubr.f32.gmra.mxu0 %v404_v43 }
  0x84   : > { %2230 = vmatprep.mubr.f32.mxu0 %v405_v44 }
  0x87   : > { %2231 = vmatmul.mubr.f32.gmra.mxu0 %v406_v45 }
  0x88   : > { %2233 = vmatprep.mubr.f32.mxu0 %v407_v46 }
  0x8b   : > { %2234 = vmatmul.mubr.f32.gmra.mxu0 %v408_v47 }
  0x8c   : > { %2236 = vmatprep.mubr.f32.mxu0 %v409_v48 }
  0x8f   : > { %2237 = vmatmul.mubr.f32.gmra.mxu0 %v410_v49 }
  0x90   : > { %2239 = vmatprep.mubr.f32.mxu0 %v411_v50 }
  0x93   : > { %2240 = vmatmul.mubr.f32.gmra.mxu0 %v412_v51 }
 0x117   : > { %v2196_v58 = vpop.f32.mrf.mxu0 }
 0x118   : > { %v508_v59 = vadd.f32 %v2196_v58, %v2866_v57 }
 0x119   : > { %v502_v60 = vpop.f32.mrf.mxu0 }
 0x11a   : > { %v503_v61 = vadd.f32 %v2866_v57, %v502_v60  ;;  %v662_v0 = vmax.f32 %v508_v59, 0.0 }
 0x11b   : > { %v2199_v62 = vpop.f32.mrf.mxu0 }
 0x11c   : > { %v661_v63 = vmax.f32 %v503_v61, 0.0  ;;  %v518_v1 = vadd.f32 %v2199_v62, %v2866_v57 }
 0x11d   : > { %v512_v2 = vpop.f32.mrf.mxu0 }
 0x11e   : > { %v513_v3 = vadd.f32 %v2866_v57, %v512_v2  ;;  %2258 = vmatprep.mubr.msk.f32.mxu1 %vm708_vm0, %v661_v63  ;;  %v664_v8 = vmax.f32 %v518_v1, 0.0 }
 0x11f   : > { %v2202_v5 = vpop.f32.mrf.mxu0  ;;  %2259 = vmatmul.mubr.msk.f32.vlgmr.msra.gmra.mxu1 %vm708_vm0, %v662_v0 }
 0x120   : > { %v663_v6 = vmax.f32 %v513_v3, 0.0  ;;  %2307 = vmatpush3.msra.mxu1 %v1065_v56  ;;  %v528_v9 = vadd.f32 %v2202_v5, %v2866_v57 }
 0x121   : > { %v522_v10 = vpop.f32.mrf.mxu0  ;;  %2308 = vmatprep.subr.mxu1 %v1064_v4 }
 0x122   : > { %v523_v11 = vadd.f32 %v2866_v57, %v522_v10  ;;  %2261 = vmatprep.mubr.msk.f32.mxu1 %vm708_vm0, %v663_v6  ;;  %2309 = vmatpush3.msra.mxu1 %v1064_v4  ;;  %v666_v15 = vmax.f32 %v528_v9, 0.0 }
 0x123   : > { %v2205_v13 = vpop.f32.mrf.mxu0  ;;  %2262 = vmatmul.mubr.msk.f32.gmra.mxu1 %vm708_vm0, %v664_v8  ;;  %2310 = vmatprep.subr.mxu1 %v1063_v7 }
 0x124   : > { %v665_v14 = vmax.f32 %v523_v11, 0.0  ;;  %2311 = vmatpush3.msra.mxu1 %v1063_v7  ;;  %v538_v16 = vadd.f32 %v2205_v13, %v2866_v57 }
 0x125   : > { %v532_v17 = vpop.f32.mrf.mxu0  ;;  %2312 = vmatprep.subr.mxu1 %v1062_v12 }
 0x126   : > { %v533_v18 = vadd.f32 %v2866_v57, %v532_v17  ;;  %2264 = vmatprep.mubr.msk.f32.mxu1 %vm708_vm0, %v665_v14  ;;  %2313 = vmatpush3.msra.mxu1 %v1062_v12  ;;  %v668_v21 = vmax.f32 %v538_v16, 0.0 }
 0x127   : > { %v2208_v19 = vpop.f32.mrf.mxu0  ;;  %2265 = vmatmul.mubr.msk.f32.gmra.mxu1 %vm708_vm0, %v666_v15 }
 0x128   : > { %v667_v20 = vmax.f32 %v533_v18, 0.0  ;;  %v548_v22 = vadd.f32 %v2208_v19, %v2866_v57 }
 0x129   : > { %v542_v23 = vpop.f32.mrf.mxu0 }
 0x12a   : > { %v543_v24 = vadd.f32 %v2866_v57, %v542_v23  ;;  %2267 = vmatprep.mubr.msk.f32.mxu1 %vm708_vm0, %v667_v20  ;;  %v670_v27 = vmax.f32 %v548_v22, 0.0 }
 0x12b   : > { %v2211_v25 = vpop.f32.mrf.mxu0  ;;  %2268 = vmatmul.mubr.msk.f32.gmra.mxu1 %vm708_vm0, %v668_v21 }
 0x12c   : > { %v669_v26 = vmax.f32 %v543_v24, 0.0  ;;  %v558_v28 = vadd.f32 %v2211_v25, %v2866_v57 }
 0x12d   : > { %v552_v29 = vpop.f32.mrf.mxu0 }
 0x12e   : > { %v553_v30 = vadd.f32 %v2866_v57, %v552_v29  ;;  %2270 = vmatprep.mubr.msk.f32.mxu1 %vm708_vm0, %v669_v26  ;;  %v672_v33 = vmax.f32 %v558_v28, 0.0 }
 0x12f   : > { %v2214_v31 = vpop.f32.mrf.mxu0  ;;  %2271 = vmatmul.mubr.msk.f32.gmra.mxu1 %vm708_vm0, %v670_v27 }
 0x130   : > { %v671_v32 = vmax.f32 %v553_v30, 0.0  ;;  %v568_v34 = vadd.f32 %v2214_v31, %v2866_v57  ;;  %v1434_v30 = vld [vmem:[%s3234_s8 + $0x38] sm:$0xff]  ;;  %v1433_v31 = vld [vmem:[%s3234_s8 + $0x30] sm:$0xff] }
 0x131   : > { %v562_v35 = vpop.f32.mrf.mxu0  ;;  %2362 = vmatprep.subr.mxu0 %v1434_v30  ;;  %2426 = vmatprep.subr.mxu1 %v1434_v30 }
 0x132   : > { %v563_v36 = vadd.f32 %v2866_v57, %v562_v35  ;;  %2273 = vmatprep.mubr.msk.f32.mxu1 %vm708_vm0, %v671_v32  ;;  %v674_v39 = vmax.f32 %v568_v34, 0.0  ;;  %2363 = vmatpush3.msra.mxu0 %v1434_v30  ;;  %v1431_v32 = vld [vmem:[%s3234_s8 + $0x20] sm:$0xff]  ;;  %v1429_v34 = vld [vmem:[%s3234_s8 + $0x10] sm:$0xff]  ;;  %v1428_v35 = vld [vmem:[%s3234_s8 + $0x8] sm:$0xff] }
 0x133   : > { %v2217_v37 = vpop.f32.mrf.mxu0  ;;  %2274 = vmatmul.mubr.msk.f32.gmra.mxu1 %vm708_vm0, %v672_v33  ;;  %2364 = vmatprep.subr.mxu0 %v1433_v31  ;;  %v1430_v33 = vld [vmem:[%s3234_s8 + $0x18] sm:$0xff] }
 0x134   : > { %v673_v38 = vmax.f32 %v563_v36, 0.0  ;;  %v578_v40 = vadd.f32 %v2217_v37, %v2866_v57  ;;  %2365 = vmatpush3.msra.mxu0 %v1433_v31  ;;  %v2965_v36 = vld [vmem:[%s3231_s5] ss:$0 sm:$0xff] }
 0x135   : > { %v572_v41 = vpop.f32.mrf.mxu0 }
 0x136   : > { %v573_v42 = vadd.f32 %v2866_v57, %v572_v41  ;;  %2276 = vmatprep.mubr.msk.f32.mxu1 %vm708_vm0, %v673_v38  ;;  %v676_v45 = vmax.f32 %v578_v40, 0.0 }
 0x137   : > { %v2220_v43 = vpop.f32.mrf.mxu0  ;;  %2277 = vmatmul.mubr.msk.f32.gmra.mxu1 %vm708_vm0, %v674_v39 }
 0x138   : > { %v675_v44 = vmax.f32 %v573_v42, 0.0  ;;  %v588_v46 = vadd.f32 %v2220_v43, %v2866_v57 }
 0x139   : > { %v582_v47 = vpop.f32.mrf.mxu0 }
 0x13a   : > { %v583_v48 = vadd.f32 %v2866_v57, %v582_v47  ;;  %2279 = vmatprep.mubr.msk.f32.mxu1 %vm708_vm0, %v675_v44  ;;  %v678_v51 = vmax.f32 %v588_v46, 0.0 }
 0x13b   : > { %v2223_v49 = vpop.f32.mrf.mxu0  ;;  %2280 = vmatmul.mubr.msk.f32.gmra.mxu1 %vm708_vm0, %v676_v45 }
 0x13c   : > { %v677_v50 = vmax.f32 %v583_v48, 0.0  ;;  %v598_v52 = vadd.f32 %v2223_v49, %v2866_v57 }
 0x13d   : > { %v592_v53 = vpop.f32.mrf.mxu0 }
 0x13e   : > { %v593_v54 = vadd.f32 %v2866_v57, %v592_v53  ;;  %2282 = vmatprep.mubr.msk.f32.mxu1 %vm708_vm0, %v677_v50  ;;  %v680_v58 = vmax.f32 %v598_v52, 0.0 }
 0x13f   : > { %v2226_v55 = vpop.f32.mrf.mxu0  ;;  %2283 = vmatmul.mubr.msk.f32.gmra.mxu1 %vm708_vm0, %v678_v51 }
 0x140   : > { %v679_v56 = vmax.f32 %v593_v54, 0.0  ;;  %v608_v59 = vadd.f32 %v2226_v55, %v2866_v57 }
 0x141   : > { %v602_v60 = vpop.f32.mrf.mxu0 }
 0x142   : > { %v603_v61 = vadd.f32 %v2866_v57, %v602_v60  ;;  %2285 = vmatprep.mubr.msk.f32.mxu1 %vm708_vm0, %v679_v56  ;;  %v682_v0 = vmax.f32 %v608_v59, 0.0 }
 0x143   : > { %v2229_v62 = vpop.f32.mrf.mxu0  ;;  %2286 = vmatmul.mubr.msk.f32.gmra.mxu1 %vm708_vm0, %v680_v58 }
 0x144   : > { %v681_v63 = vmax.f32 %v603_v61, 0.0  ;;  %v618_v1 = vadd.f32 %v2229_v62, %v2866_v57 }
 0x145   : > { %v612_v2 = vpop.f32.mrf.mxu0 }
 0x146   : > { %v613_v3 = vadd.f32 %v2866_v57, %v612_v2  ;;  %2288 = vmatprep.mubr.msk.f32.mxu1 %vm708_vm0, %v681_v63  ;;  %v684_v6 = vmax.f32 %v618_v1, 0.0 }
 0x147   : > { %v2232_v4 = vpop.f32.mrf.mxu0  ;;  %2289 = vmatmul.mubr.msk.f32.gmra.mxu1 %vm708_vm0, %v682_v0 }
 0x148   : > { %v683_v5 = vmax.f32 %v613_v3, 0.0  ;;  %v628_v7 = vadd.f32 %v2232_v4, %v2866_v57 }
 0x149   : > { %v622_v8 = vpop.f32.mrf.mxu0 }
 0x14a   : > { %v623_v9 = vadd.f32 %v2866_v57, %v622_v8  ;;  %2291 = vmatprep.mubr.msk.f32.mxu1 %vm708_vm0, %v683_v5  ;;  %v686_v12 = vmax.f32 %v628_v7, 0.0 }
 0x14b   : > { %v2235_v10 = vpop.f32.mrf.mxu0  ;;  %2292 = vmatmul.mubr.msk.f32.gmra.mxu1 %vm708_vm0, %v684_v6 }
 0x14c   : > { %v685_v11 = vmax.f32 %v623_v9, 0.0  ;;  %v638_v13 = vadd.f32 %v2235_v10, %v2866_v57 }
 0x14d   : > { %v632_v14 = vpop.f32.mrf.mxu0 }
 0x14e   : > { %v633_v15 = vadd.f32 %v2866_v57, %v632_v14  ;;  %2294 = vmatprep.mubr.msk.f32.mxu1 %vm708_vm0, %v685_v11  ;;  %v688_v18 = vmax.f32 %v638_v13, 0.0 }
 0x14f   : > { %v2238_v16 = vpop.f32.mrf.mxu0  ;;  %2295 = vmatmul.mubr.msk.f32.gmra.mxu1 %vm708_vm0, %v686_v12 }
 0x150   : > { %v687_v17 = vmax.f32 %v633_v15, 0.0  ;;  %v648_v19 = vadd.f32 %v2238_v16, %v2866_v57 }
 0x151   : > { %v642_v20 = vpop.f32.mrf.mxu0 }
 0x152   : > { %v643_v21 = vadd.f32 %v2866_v57, %v642_v20  ;;  %2297 = vmatprep.mubr.msk.f32.mxu1 %vm708_vm0, %v687_v17  ;;  %v690_v24 = vmax.f32 %v648_v19, 0.0 }
 0x153   : > { %v2241_v22 = vpop.f32.mrf.mxu0  ;;  %2298 = vmatmul.mubr.msk.f32.gmra.mxu1 %vm708_vm0, %v688_v18 }
 0x154   : > { %v689_v23 = vmax.f32 %v643_v21, 0.0  ;;  %v658_v25 = vadd.f32 %v2241_v22, %v2866_v57 }
 0x155   : > { %v652_v26 = vpop.f32.mrf.mxu0 }
 0x156   : > { %v653_v27 = vadd.f32 %v2866_v57, %v652_v26  ;;  %2300 = vmatprep.mubr.msk.f32.mxu1 %vm708_vm0, %v689_v23  ;;  %v692_v29 = vmax.f32 %v658_v25, 0.0  ;;  %v1432_v57 = vld [vmem:[%s3234_s8 + $0x28] sm:$0xff] }
 0x157   : > { %2301 = vmatmul.mubr.msk.f32.gmra.mxu1 %vm708_vm0, %v690_v24  ;;  %2366 = vmatprep.subr.mxu0 %v1432_v57 }
 0x158   : > { %v691_v28 = vmax.f32 %v653_v27, 0.0  ;;  %2367 = vmatpush3.msra.mxu0 %v1432_v57 }
 0x159   : > { %2368 = vmatprep.subr.mxu0 %v1431_v32 }
 0x15a   : > { %2303 = vmatprep.mubr.msk.f32.mxu1 %vm708_vm0, %v691_v28  ;;  %2369 = vmatpush3.msra.mxu0 %v1431_v32 }
 0x15b   : > { %2304 = vmatmul.mubr.msk.f32.gmra.mxu1 %vm708_vm0, %v692_v29  ;;  %2370 = vmatprep.subr.mxu0 %v1430_v33 }
 0x15c   : > { %2371 = vmatpush3.msra.mxu0 %v1430_v33 }
 0x15d   : > { %2372 = vmatprep.subr.mxu0 %v1429_v34 }
 0x15e   : > { %2373 = vmatpush3.msra.mxu0 %v1429_v34 }
 0x15f   : > { %2374 = vmatprep.subr.mxu0 %v1428_v35 }
 0x160   : > { %2375 = vmatpush3.msra.mxu0 %v1428_v35 }
 0x1df   : > { %v2260_v37 = vpop.f32.mrf.mxu1 }
 0x1e0   : > { %v877_v38 = vadd.f32 %v2260_v37, %v2965_v36 }
 0x1e1   : > { %v871_v39 = vpop.f32.mrf.mxu1 }
 0x1e2   : > { %v872_v40 = vadd.f32 %v2965_v36, %v871_v39  ;;  %v1031_v43 = vmax.f32 %v877_v38, 0.0 }
 0x1e3   : > { %v2263_v41 = vpop.f32.mrf.mxu1 }
 0x1e4   : > { %v1030_v42 = vmax.f32 %v872_v40, 0.0  ;;  %v887_v44 = vadd.f32 %v2263_v41, %v2965_v36 }
 0x1e5   : > { %v881_v45 = vpop.f32.mrf.mxu1 }
 0x1e6   : > { %v882_v46 = vadd.f32 %v2965_v36, %v881_v45  ;;  %2314 = vmatprep.mubr.msk.f32.mxu1 %vm1073_vm1, %v1030_v42  ;;  %v1033_v49 = vmax.f32 %v887_v44, 0.0 }
 0x1e7   : > { %v2266_v47 = vpop.f32.mrf.mxu1  ;;  %2315 = vmatmul.mubr.msk.f32.vlgmr.msra.gmra.mxu1 %vm1073_vm1, %v1031_v43 }
 0x1e8   : > { %v1032_v48 = vmax.f32 %v882_v46, 0.0  ;;  %2434 = vmatpush3.msra.mxu1 %v1434_v30  ;;  %v897_v50 = vadd.f32 %v2266_v47, %v2965_v36 }
 0x1e9   : > { %v891_v51 = vpop.f32.mrf.mxu1  ;;  %2427 = vmatprep.subr.mxu1 %v1433_v31 }
 0x1ea   : > { %v892_v52 = vadd.f32 %v2965_v36, %v891_v51  ;;  %2317 = vmatprep.mubr.msk.f32.mxu1 %vm1073_vm1, %v1032_v48  ;;  %2435 = vmatpush3.msra.mxu1 %v1433_v31  ;;  %v1035_v55 = vmax.f32 %v897_v50, 0.0 }
 0x1eb   : > { %v2269_v53 = vpop.f32.mrf.mxu1  ;;  %2318 = vmatmul.mubr.msk.f32.gmra.mxu1 %vm1073_vm1, %v1033_v49  ;;  %2428 = vmatprep.subr.mxu1 %v1432_v57 }
 0x1ec   : > { %v1034_v54 = vmax.f32 %v892_v52, 0.0  ;;  %2436 = vmatpush3.msra.mxu1 %v1432_v57  ;;  %v907_v56 = vadd.f32 %v2269_v53, %v2965_v36 }
 0x1ed   : > { %v901_v58 = vpop.f32.mrf.mxu1  ;;  %2429 = vmatprep.subr.mxu1 %v1431_v32 }
 0x1ee   : > { %v902_v59 = vadd.f32 %v2965_v36, %v901_v58  ;;  %2320 = vmatprep.mubr.msk.f32.mxu1 %vm1073_vm1, %v1034_v54  ;;  %2437 = vmatpush3.msra.mxu1 %v1431_v32  ;;  %v1037_v62 = vmax.f32 %v907_v56, 0.0 }
 0x1ef   : > { %v2272_v60 = vpop.f32.mrf.mxu1  ;;  %2321 = vmatmul.mubr.msk.f32.gmra.mxu1 %vm1073_vm1, %v1035_v55  ;;  %2430 = vmatprep.subr.mxu1 %v1430_v33 }
 0x1f0   : > { %v1036_v61 = vmax.f32 %v902_v59, 0.0  ;;  %2438 = vmatpush3.msra.mxu1 %v1430_v33  ;;  %v917_v63 = vadd.f32 %v2272_v60, %v2965_v36 }
 0x1f1   : > { %v911_v0 = vpop.f32.mrf.mxu1  ;;  %2431 = vmatprep.subr.mxu1 %v1429_v34 }
 0x1f2   : > { %v912_v1 = vadd.f32 %v2965_v36, %v911_v0  ;;  %2323 = vmatprep.mubr.msk.f32.mxu1 %vm1073_vm1, %v1036_v61  ;;  %2439 = vmatpush3.msra.mxu1 %v1429_v34  ;;  %v1039_v4 = vmax.f32 %v917_v63, 0.0 }
 0x1f3   : > { %v2275_v2 = vpop.f32.mrf.mxu1  ;;  %2324 = vmatmul.mubr.msk.f32.gmra.mxu1 %vm1073_vm1, %v1037_v62  ;;  %2432 = vmatprep.subr.mxu1 %v1428_v35 }
 0x1f4   : > { %v1038_v3 = vmax.f32 %v912_v1, 0.0  ;;  %2440 = vmatpush3.msra.mxu1 %v1428_v35  ;;  %v927_v5 = vadd.f32 %v2275_v2, %v2965_v36 }
 0x1f5   : > { %v921_v6 = vpop.f32.mrf.mxu1 }
 0x1f6   : > { %v922_v7 = vadd.f32 %v2965_v36, %v921_v6  ;;  %2326 = vmatprep.mubr.msk.f32.mxu1 %vm1073_vm1, %v1038_v3  ;;  %v1041_v10 = vmax.f32 %v927_v5, 0.0 }
 0x1f7   : > { %v2278_v8 = vpop.f32.mrf.mxu1  ;;  %2327 = vmatmul.mubr.msk.f32.gmra.mxu1 %vm1073_vm1, %v1039_v4 }
 0x1f8   : > { %v1040_v9 = vmax.f32 %v922_v7, 0.0  ;;  %v937_v11 = vadd.f32 %v2278_v8, %v2965_v36  ;;  %v1427_v7 = vld [vmem:[%s3234_s8] sm:$0xff] }
 0x1f9   : > { %v931_v12 = vpop.f32.mrf.mxu1  ;;  %2376 = vmatprep.subr.mxu0 %v1427_v7  ;;  %2433 = vmatprep.subr.mxu1 %v1427_v7 }
 0x1fa   : > { %v932_v13 = vadd.f32 %v2965_v36, %v931_v12  ;;  %2329 = vmatprep.mubr.msk.f32.mxu1 %vm1073_vm1, %v1040_v9  ;;  %v1043_v16 = vmax.f32 %v937_v11, 0.0  ;;  %2377 = vmatpush3.msra.mxu0 %v1427_v7 }
 0x1fb   : > { %v2281_v14 = vpop.f32.mrf.mxu1  ;;  %2330 = vmatmul.mubr.msk.f32.gmra.mxu1 %vm1073_vm1, %v1041_v10 }
 0x1fc   : > { %v1042_v15 = vmax.f32 %v932_v13, 0.0  ;;  %v947_v17 = vadd.f32 %v2281_v14, %v2965_v36  ;;  %2441 = vmatpush3.msra.mxu1 %v1427_v7 }
 0x1fd   : > { %v941_v18 = vpop.f32.mrf.mxu1 }
 0x1fe   : > { %v942_v19 = vadd.f32 %v2965_v36, %v941_v18  ;;  %2332 = vmatprep.mubr.msk.f32.mxu1 %vm1073_vm1, %v1042_v15  ;;  %v1045_v22 = vmax.f32 %v947_v17, 0.0 }
 0x1ff   : > { %v2284_v20 = vpop.f32.mrf.mxu1  ;;  %2333 = vmatmul.mubr.msk.f32.gmra.mxu1 %vm1073_vm1, %v1043_v16 }
 0x200   : > { %v1044_v21 = vmax.f32 %v942_v19, 0.0  ;;  %v957_v23 = vadd.f32 %v2284_v20, %v2965_v36 }
 0x201   : > { %v951_v24 = vpop.f32.mrf.mxu1 }
 0x202   : > { %v952_v25 = vadd.f32 %v2965_v36, %v951_v24  ;;  %2335 = vmatprep.mubr.msk.f32.mxu1 %vm1073_vm1, %v1044_v21  ;;  %v1047_v28 = vmax.f32 %v957_v23, 0.0 }
 0x203   : > { %v2287_v26 = vpop.f32.mrf.mxu1  ;;  %2336 = vmatmul.mubr.msk.f32.gmra.mxu1 %vm1073_vm1, %v1045_v22 }
 0x204   : > { %v1046_v27 = vmax.f32 %v952_v25, 0.0  ;;  %v967_v29 = vadd.f32 %v2287_v26, %v2965_v36 }
 0x205   : > { %v961_v30 = vpop.f32.mrf.mxu1 }
 0x206   : > { %v962_v31 = vadd.f32 %v2965_v36, %v961_v30  ;;  %2338 = vmatprep.mubr.msk.f32.mxu1 %vm1073_vm1, %v1046_v27  ;;  %v1049_v33 = vmax.f32 %v967_v29, 0.0 }
 0x207   : > { %v2290_v57 = vpop.f32.mrf.mxu1  ;;  %2339 = vmatmul.mubr.msk.f32.gmra.mxu1 %vm1073_vm1, %v1047_v28 }
 0x208   : > { %v1048_v32 = vmax.f32 %v962_v31, 0.0  ;;  %v977_v34 = vadd.f32 %v2290_v57, %v2965_v36 }
 0x209   : > { %v971_v35 = vpop.f32.mrf.mxu1 }
 0x20a   : > { %v972_v37 = vadd.f32 %v2965_v36, %v971_v35  ;;  %2341 = vmatprep.mubr.msk.f32.mxu1 %vm1073_vm1, %v1048_v32  ;;  %v1051_v40 = vmax.f32 %v977_v34, 0.0 }
 0x20b   : > { %v2293_v38 = vpop.f32.mrf.mxu1  ;;  %2342 = vmatmul.mubr.msk.f32.gmra.mxu1 %vm1073_vm1, %v1049_v33 }
 0x20c   : > { %v1050_v39 = vmax.f32 %v972_v37, 0.0  ;;  %v987_v41 = vadd.f32 %v2293_v38, %v2965_v36 }
 0x20d   : > { %v981_v42 = vpop.f32.mrf.mxu1 }
 0x20e   : > { %v982_v43 = vadd.f32 %v2965_v36, %v981_v42  ;;  %2344 = vmatprep.mubr.msk.f32.mxu1 %vm1073_vm1, %v1050_v39  ;;  %v1053_v46 = vmax.f32 %v987_v41, 0.0 }
 0x20f   : > { %v2296_v44 = vpop.f32.mrf.mxu1  ;;  %2345 = vmatmul.mubr.msk.f32.gmra.mxu1 %vm1073_vm1, %v1051_v40 }
 0x210   : > { %v1052_v45 = vmax.f32 %v982_v43, 0.0  ;;  %v997_v47 = vadd.f32 %v2296_v44, %v2965_v36 }
 0x211   : > { %v991_v48 = vpop.f32.mrf.mxu1 }
 0x212   : > { %v992_v49 = vadd.f32 %v2965_v36, %v991_v48  ;;  %2347 = vmatprep.mubr.msk.f32.mxu1 %vm1073_vm1, %v1052_v45  ;;  %v1055_v52 = vmax.f32 %v997_v47, 0.0 }
 0x213   : > { %v2299_v50 = vpop.f32.mrf.mxu1  ;;  %2348 = vmatmul.mubr.msk.f32.gmra.mxu1 %vm1073_vm1, %v1053_v46 }
 0x214   : > { %v1054_v51 = vmax.f32 %v992_v49, 0.0  ;;  %v1007_v53 = vadd.f32 %v2299_v50, %v2965_v36 }
 0x215   : > { %v1001_v54 = vpop.f32.mrf.mxu1 }
 0x216   : > { %v1002_v55 = vadd.f32 %v2965_v36, %v1001_v54  ;;  %2350 = vmatprep.mubr.msk.f32.mxu1 %vm1073_vm1, %v1054_v51  ;;  %v1057_v59 = vmax.f32 %v1007_v53, 0.0 }
 0x217   : > { %v2302_v56 = vpop.f32.mrf.mxu1  ;;  %2351 = vmatmul.mubr.msk.f32.gmra.mxu1 %vm1073_vm1, %v1055_v52 }
 0x218   : > { %v1056_v58 = vmax.f32 %v1002_v55, 0.0  ;;  %v1017_v60 = vadd.f32 %v2302_v56, %v2965_v36 }
 0x219   : > { %v1011_v61 = vpop.f32.mrf.mxu1 }
 0x21a   : > { %v1012_v62 = vadd.f32 %v2965_v36, %v1011_v61  ;;  %2353 = vmatprep.mubr.msk.f32.mxu1 %vm1073_vm1, %v1056_v58  ;;  %v1059_v1 = vmax.f32 %v1017_v60, 0.0 }
 0x21b   : > { %v2305_v63 = vpop.f32.mrf.mxu1  ;;  %2354 = vmatmul.mubr.msk.f32.gmra.mxu1 %vm1073_vm1, %v1057_v59 }
 0x21c   : > { %v1058_v0 = vmax.f32 %v1012_v62, 0.0  ;;  %v1027_v2 = vadd.f32 %v2305_v63, %v2965_v36 }
 0x21d   : > { %v1021_v3 = vpop.f32.mrf.mxu1 }
 0x21e   : > { %v1022_v4 = vadd.f32 %v2965_v36, %v1021_v3  ;;  %2356 = vmatprep.mubr.msk.f32.mxu1 %vm1073_vm1, %v1058_v0  ;;  %v1061_v6 = vmax.f32 %v1027_v2, 0.0  ;;  %v3037_v36 = vld [vmem:[%s3233_s7] ss:$0 sm:$0xff] }
 0x21f   : > { %2357 = vmatmul.mubr.msk.f32.gmra.mxu1 %vm1073_vm1, %v1059_v1 }
 0x220   : > { %v1060_v5 = vmax.f32 %v1022_v4, 0.0 }
 0x222   : > { %2359 = vmatprep.mubr.msk.f32.mxu1 %vm1073_vm1, %v1060_v5 }
 0x223   : > { %2360 = vmatmul.mubr.msk.f32.gmra.mxu1 %vm1073_vm1, %v1061_v6 }
 0x2a7   : > { %v2316_v8 = vpop.f32.mrf.mxu1 }
 0x2a8   : > { %v1242_v9 = vadd.f32 %v2316_v8, %v3037_v36 }
 0x2a9   : > { %v1236_v10 = vpop.f32.mrf.mxu1 }
 0x2aa   : > { %v1237_v11 = vadd.f32 %v3037_v36, %v1236_v10  ;;  %v1396_v14 = vmax.f32 %v1242_v9, 0.0 }
 0x2ab   : > { %v2319_v12 = vpop.f32.mrf.mxu1 }
 0x2ac   : > { %v1395_v13 = vmax.f32 %v1237_v11, 0.0  ;;  %v1252_v15 = vadd.f32 %v2319_v12, %v3037_v36 }
 0x2ad   : > { %v1246_v16 = vpop.f32.mrf.mxu1 }
 0x2ae   : > { %v1247_v17 = vadd.f32 %v3037_v36, %v1246_v16  ;;  %2378 = vmatprep.mubr.msk.f32.mxu0 %vm708_vm0, %v1395_v13  ;;  %v1398_v20 = vmax.f32 %v1252_v15, 0.0 }
 0x2af   : > { %v2322_v18 = vpop.f32.mrf.mxu1  ;;  %2379 = vmatmul.mubr.msk.f32.vlgmr.msra.gmra.mxu0 %vm708_vm0, %v1396_v14 }
 0x2b0   : > { %v1397_v19 = vmax.f32 %v1247_v17, 0.0  ;;  %v1262_v21 = vadd.f32 %v2322_v18, %v3037_v36 }
 0x2b1   : > { %v1256_v22 = vpop.f32.mrf.mxu1 }
 0x2b2   : > { %v1257_v23 = vadd.f32 %v3037_v36, %v1256_v22  ;;  %2381 = vmatprep.mubr.msk.f32.mxu0 %vm708_vm0, %v1397_v19  ;;  %v1400_v26 = vmax.f32 %v1262_v21, 0.0 }
 0x2b3   : > { %v2325_v24 = vpop.f32.mrf.mxu1  ;;  %2382 = vmatmul.mubr.msk.f32.gmra.mxu0 %vm708_vm0, %v1398_v20 }
 0x2b4   : > { %v1399_v25 = vmax.f32 %v1257_v23, 0.0  ;;  %v1272_v27 = vadd.f32 %v2325_v24, %v3037_v36 }
 0x2b5   : > { %v1266_v28 = vpop.f32.mrf.mxu1 }
 0x2b6   : > { %v1267_v29 = vadd.f32 %v3037_v36, %v1266_v28  ;;  %2384 = vmatprep.mubr.msk.f32.mxu0 %vm708_vm0, %v1399_v25  ;;  %v1402_v57 = vmax.f32 %v1272_v27, 0.0 }
 0x2b7   : > { %v2328_v30 = vpop.f32.mrf.mxu1  ;;  %2385 = vmatmul.mubr.msk.f32.gmra.mxu0 %vm708_vm0, %v1400_v26 }
 0x2b8   : > { %v1401_v31 = vmax.f32 %v1267_v29, 0.0  ;;  %v1282_v32 = vadd.f32 %v2328_v30, %v3037_v36 }
 0x2b9   : > { %v1276_v33 = vpop.f32.mrf.mxu1 }
 0x2ba   : > { %v1277_v34 = vadd.f32 %v3037_v36, %v1276_v33  ;;  %2387 = vmatprep.mubr.msk.f32.mxu0 %vm708_vm0, %v1401_v31  ;;  %v1404_v38 = vmax.f32 %v1282_v32, 0.0 }
 0x2bb   : > { %v2331_v35 = vpop.f32.mrf.mxu1  ;;  %2388 = vmatmul.mubr.msk.f32.gmra.mxu0 %vm708_vm0, %v1402_v57 }
 0x2bc   : > { %v1403_v37 = vmax.f32 %v1277_v34, 0.0  ;;  %v1292_v39 = vadd.f32 %v2331_v35, %v3037_v36 }
 0x2bd   : > { %v1286_v40 = vpop.f32.mrf.mxu1 }
 0x2be   : > { %v1287_v41 = vadd.f32 %v3037_v36, %v1286_v40  ;;  %2390 = vmatprep.mubr.msk.f32.mxu0 %vm708_vm0, %v1403_v37  ;;  %v1406_v44 = vmax.f32 %v1292_v39, 0.0 }
 0x2bf   : > { %v2334_v42 = vpop.f32.mrf.mxu1  ;;  %2391 = vmatmul.mubr.msk.f32.gmra.mxu0 %vm708_vm0, %v1404_v38 }
 0x2c0   : > { %v1405_v43 = vmax.f32 %v1287_v41, 0.0  ;;  %v1302_v45 = vadd.f32 %v2334_v42, %v3037_v36  ;;  %v3106_v41 = vld [vmem:[%s3235_s9] ss:$0 sm:$0xff] }
 0x2c1   : > { %v1296_v46 = vpop.f32.mrf.mxu1 }
 0x2c2   : > { %v1297_v47 = vadd.f32 %v3037_v36, %v1296_v46  ;;  %2393 = vmatprep.mubr.msk.f32.mxu0 %vm708_vm0, %v1405_v43  ;;  %v1408_v50 = vmax.f32 %v1302_v45, 0.0 }
 0x2c3   : > { %v2337_v48 = vpop.f32.mrf.mxu1  ;;  %2394 = vmatmul.mubr.msk.f32.gmra.mxu0 %vm708_vm0, %v1406_v44 }
 0x2c4   : > { %v1407_v49 = vmax.f32 %v1297_v47, 0.0  ;;  %v1312_v51 = vadd.f32 %v2337_v48, %v3037_v36 }
 0x2c5   : > { %v1306_v52 = vpop.f32.mrf.mxu1 }
 0x2c6   : > { %v1307_v53 = vadd.f32 %v3037_v36, %v1306_v52  ;;  %2396 = vmatprep.mubr.msk.f32.mxu0 %vm708_vm0, %v1407_v49  ;;  %v1410_v56 = vmax.f32 %v1312_v51, 0.0 }
 0x2c7   : > { %v2340_v54 = vpop.f32.mrf.mxu1  ;;  %2397 = vmatmul.mubr.msk.f32.gmra.mxu0 %vm708_vm0, %v1408_v50 }
 0x2c8   : > { %v1409_v55 = vmax.f32 %v1307_v53, 0.0  ;;  %v1322_v58 = vadd.f32 %v2340_v54, %v3037_v36 }
 0x2c9   : > { %v1316_v59 = vpop.f32.mrf.mxu1 }
 0x2ca   : > { %v1317_v60 = vadd.f32 %v3037_v36, %v1316_v59  ;;  %2399 = vmatprep.mubr.msk.f32.mxu0 %vm708_vm0, %v1409_v55  ;;  %v1412_v63 = vmax.f32 %v1322_v58, 0.0 }
 0x2cb   : > { %v2343_v61 = vpop.f32.mrf.mxu1  ;;  %2400 = vmatmul.mubr.msk.f32.gmra.mxu0 %vm708_vm0, %v1410_v56 }
 0x2cc   : > { %v1411_v62 = vmax.f32 %v1317_v60, 0.0  ;;  %v1332_v0 = vadd.f32 %v2343_v61, %v3037_v36 }
 0x2cd   : > { %v1326_v1 = vpop.f32.mrf.mxu1 }
 0x2ce   : > { %v1327_v2 = vadd.f32 %v3037_v36, %v1326_v1  ;;  %2402 = vmatprep.mubr.msk.f32.mxu0 %vm708_vm0, %v1411_v62  ;;  %v1414_v5 = vmax.f32 %v1332_v0, 0.0 }
 0x2cf   : > { %v2346_v3 = vpop.f32.mrf.mxu1  ;;  %2403 = vmatmul.mubr.msk.f32.gmra.mxu0 %vm708_vm0, %v1412_v63 }
 0x2d0   : > { %v1413_v4 = vmax.f32 %v1327_v2, 0.0  ;;  %v1342_v6 = vadd.f32 %v2346_v3, %v3037_v36 }
 0x2d1   : > { %v1336_v7 = vpop.f32.mrf.mxu1 }
 0x2d2   : > { %v1337_v8 = vadd.f32 %v3037_v36, %v1336_v7  ;;  %2405 = vmatprep.mubr.msk.f32.mxu0 %vm708_vm0, %v1413_v4  ;;  %v1416_v11 = vmax.f32 %v1342_v6, 0.0 }
 0x2d3   : > { %v2349_v9 = vpop.f32.mrf.mxu1  ;;  %2406 = vmatmul.mubr.msk.f32.gmra.mxu0 %vm708_vm0, %v1414_v5 }
 0x2d4   : > { %v1415_v10 = vmax.f32 %v1337_v8, 0.0  ;;  %v1352_v12 = vadd.f32 %v2349_v9, %v3037_v36 }
 0x2d5   : > { %v1346_v13 = vpop.f32.mrf.mxu1 }
 0x2d6   : > { %v1347_v14 = vadd.f32 %v3037_v36, %v1346_v13  ;;  %2408 = vmatprep.mubr.msk.f32.mxu0 %vm708_vm0, %v1415_v10  ;;  %v1418_v17 = vmax.f32 %v1352_v12, 0.0 }
 0x2d7   : > { %v2352_v15 = vpop.f32.mrf.mxu1  ;;  %2409 = vmatmul.mubr.msk.f32.gmra.mxu0 %vm708_vm0, %v1416_v11 }
 0x2d8   : > { %v1417_v16 = vmax.f32 %v1347_v14, 0.0  ;;  %v1362_v18 = vadd.f32 %v2352_v15, %v3037_v36 }
 0x2d9   : > { %v1356_v19 = vpop.f32.mrf.mxu1 }
 0x2da   : > { %v1357_v20 = vadd.f32 %v3037_v36, %v1356_v19  ;;  %2411 = vmatprep.mubr.msk.f32.mxu0 %vm708_vm0, %v1417_v16  ;;  %v1420_v23 = vmax.f32 %v1362_v18, 0.0 }
 0x2db   : > { %v2355_v21 = vpop.f32.mrf.mxu1  ;;  %2412 = vmatmul.mubr.msk.f32.gmra.mxu0 %vm708_vm0, %v1418_v17 }
 0x2dc   : > { %v1419_v22 = vmax.f32 %v1357_v20, 0.0  ;;  %v1372_v24 = vadd.f32 %v2355_v21, %v3037_v36 }
 0x2dd   : > { %v1366_v25 = vpop.f32.mrf.mxu1 }
 0x2de   : > { %v1367_v26 = vadd.f32 %v3037_v36, %v1366_v25  ;;  %2414 = vmatprep.mubr.msk.f32.mxu0 %vm708_vm0, %v1419_v22  ;;  %v1422_v29 = vmax.f32 %v1372_v24, 0.0 }
 0x2df   : > { %v2358_v27 = vpop.f32.mrf.mxu1  ;;  %2415 = vmatmul.mubr.msk.f32.gmra.mxu0 %vm708_vm0, %v1420_v23 }
 0x2e0   : > { %v1421_v28 = vmax.f32 %v1367_v26, 0.0  ;;  %v1382_v30 = vadd.f32 %v2358_v27, %v3037_v36 }
 0x2e1   : > { %v1376_v31 = vpop.f32.mrf.mxu1 }
 0x2e2   : > { %v1377_v57 = vadd.f32 %v3037_v36, %v1376_v31  ;;  %2417 = vmatprep.mubr.msk.f32.mxu0 %vm708_vm0, %v1421_v28  ;;  %v1424_v34 = vmax.f32 %v1382_v30, 0.0 }
 0x2e3   : > { %v2361_v32 = vpop.f32.mrf.mxu1  ;;  %2418 = vmatmul.mubr.msk.f32.gmra.mxu0 %vm708_vm0, %v1422_v29 }
 0x2e4   : > { %v1423_v33 = vmax.f32 %v1377_v57, 0.0  ;;  %v1392_v35 = vadd.f32 %v2361_v32, %v3037_v36 }
 0x2e5   : > { %v1386_v37 = vpop.f32.mrf.mxu1 }
 0x2e6   : > { %v1387_v38 = vadd.f32 %v3037_v36, %v1386_v37  ;;  %2420 = vmatprep.mubr.msk.f32.mxu1 %vm708_vm0, %v1423_v33  ;;  %v1426_v40 = vmax.f32 %v1392_v35, 0.0 }
 0x2e7   : > { %2421 = vmatmul.mubr.msk.f32.vlgmr.msra.gmra.mxu1 %vm708_vm0, %v1424_v34 }
 0x2e8   : > { %v1425_v39 = vmax.f32 %v1387_v38, 0.0 }
 0x2ea   : > { %2423 = vmatprep.mubr.msk.f32.mxu1 %vm708_vm0, %v1425_v39 }
 0x2eb   : > { %2424 = vmatmul.mubr.msk.f32.gmra.mxu1 %vm708_vm0, %v1426_v40 }
 0x36f   : > { %v2380_v42 = vpop.f32.mrf.mxu0 }
 0x370   : > { %v1610_v43 = vadd.f32 %v2380_v42, %v3106_v41 }
 0x371   : > { %v1604_v44 = vpop.f32.mrf.mxu0 }
 0x372   : > { %1764 = vst [vmem:[%s3111_s30 + $0x8] sm:$0xff] %v1610_v43  ;;  %v1605_v36 = vadd.f32 %v3106_v41, %v1604_v44 }
 0x373   : > { %v2383_v45 = vpop.f32.mrf.mxu0 }
 0x374   : > { %1763 = vst [vmem:[%s3111_s30] sm:$0xff] %v1605_v36  ;;  %v1620_v46 = vadd.f32 %v2383_v45, %v3106_v41 }
 0x375   : > { %v1614_v47 = vpop.f32.mrf.mxu0 }
 0x376   : > { %1766 = vst [vmem:[%s3111_s30 + $0x18] sm:$0xff] %v1620_v46  ;;  %v1615_v48 = vadd.f32 %v3106_v41, %v1614_v47 }
 0x377   : > { %v2386_v49 = vpop.f32.mrf.mxu0 }
 0x378   : > { %1765 = vst [vmem:[%s3111_s30 + $0x10] sm:$0xff] %v1615_v48  ;;  %v1630_v50 = vadd.f32 %v2386_v49, %v3106_v41 }
 0x379   : > { %v1624_v51 = vpop.f32.mrf.mxu0 }
 0x37a   : > { %1768 = vst [vmem:[%s3111_s30 + $0x28] sm:$0xff] %v1630_v50  ;;  %v1625_v52 = vadd.f32 %v3106_v41, %v1624_v51 }
 0x37b   : > { %v2389_v53 = vpop.f32.mrf.mxu0 }
 0x37c   : > { %1767 = vst [vmem:[%s3111_s30 + $0x20] sm:$0xff] %v1625_v52  ;;  %v1640_v54 = vadd.f32 %v2389_v53, %v3106_v41 }
 0x37d   : > { %v1634_v55 = vpop.f32.mrf.mxu0 }
 0x37e   : > { %1770 = vst [vmem:[%s3111_s30 + $0x38] sm:$0xff] %v1640_v54  ;;  %v1635_v56 = vadd.f32 %v3106_v41, %v1634_v55 }
 0x37f   : > { %v2392_v58 = vpop.f32.mrf.mxu0 }
 0x380   : > { %1769 = vst [vmem:[%s3111_s30 + $0x30] sm:$0xff] %v1635_v56  ;;  %v1650_v59 = vadd.f32 %v2392_v58, %v3106_v41 }
 0x381   : > { %v1644_v60 = vpop.f32.mrf.mxu0 }
 0x382   : > { %1772 = vst [vmem:[%s3111_s30 + $0x48] sm:$0xff] %v1650_v59  ;;  %v1645_v61 = vadd.f32 %v3106_v41, %v1644_v60 }
 0x383   : > { %v2395_v62 = vpop.f32.mrf.mxu0 }
 0x384   : > { %1771 = vst [vmem:[%s3111_s30 + $0x40] sm:$0xff] %v1645_v61  ;;  %v1660_v63 = vadd.f32 %v2395_v62, %v3106_v41 }
 0x385   : > { %v1654_v0 = vpop.f32.mrf.mxu0 }
 0x386   : > { %1774 = vst [vmem:[%s3111_s30 + $0x58] sm:$0xff] %v1660_v63  ;;  %v1655_v1 = vadd.f32 %v3106_v41, %v1654_v0 }
 0x387   : > { %v2398_v2 = vpop.f32.mrf.mxu0 }
 0x388   : > { %1773 = vst [vmem:[%s3111_s30 + $0x50] sm:$0xff] %v1655_v1  ;;  %v1670_v3 = vadd.f32 %v2398_v2, %v3106_v41 }
 0x389   : > { %v1664_v4 = vpop.f32.mrf.mxu0 }
 0x38a   : > { %1776 = vst [vmem:[%s3111_s30 + $0x68] sm:$0xff] %v1670_v3  ;;  %v1665_v5 = vadd.f32 %v3106_v41, %v1664_v4 }
 0x38b   : > { %v2401_v6 = vpop.f32.mrf.mxu0 }
 0x38c   : > { %1775 = vst [vmem:[%s3111_s30 + $0x60] sm:$0xff] %v1665_v5  ;;  %v1680_v7 = vadd.f32 %v2401_v6, %v3106_v41 }
 0x38d   : > { %v1674_v8 = vpop.f32.mrf.mxu0 }
 0x38e   : > { %1778 = vst [vmem:[%s3111_s30 + $0x78] sm:$0xff] %v1680_v7  ;;  %v1675_v9 = vadd.f32 %v3106_v41, %v1674_v8 }
 0x38f   : > { %v2404_v10 = vpop.f32.mrf.mxu0 }
 0x390   : > { %1777 = vst [vmem:[%s3111_s30 + $0x70] sm:$0xff] %v1675_v9  ;;  %v1690_v11 = vadd.f32 %v2404_v10, %v3106_v41 }
 0x391   : > { %v1684_v12 = vpop.f32.mrf.mxu0 }
 0x392   : > { %1780 = vst [vmem:[%s3111_s30 + $0x88] sm:$0xff] %v1690_v11  ;;  %v1685_v13 = vadd.f32 %v3106_v41, %v1684_v12 }
 0x393   : > { %v2407_v14 = vpop.f32.mrf.mxu0 }
 0x394   : > { %1779 = vst [vmem:[%s3111_s30 + $0x80] sm:$0xff] %v1685_v13  ;;  %v1700_v15 = vadd.f32 %v2407_v14, %v3106_v41 }
 0x395   : > { %v1694_v16 = vpop.f32.mrf.mxu0 }
 0x396   : > { %1782 = vst [vmem:[%s3111_s30 + $0x98] sm:$0xff] %v1700_v15  ;;  %v1695_v17 = vadd.f32 %v3106_v41, %v1694_v16 }
 0x397   : > { %v2410_v18 = vpop.f32.mrf.mxu0 }
 0x398   : > { %1781 = vst [vmem:[%s3111_s30 + $0x90] sm:$0xff] %v1695_v17  ;;  %v1710_v19 = vadd.f32 %v2410_v18, %v3106_v41 }
 0x399   : > { %v1704_v20 = vpop.f32.mrf.mxu0 }
 0x39a   : > { %1784 = vst [vmem:[%s3111_s30 + $0xa8] sm:$0xff] %v1710_v19  ;;  %v1705_v21 = vadd.f32 %v3106_v41, %v1704_v20 }
 0x39b   : > { %v2413_v22 = vpop.f32.mrf.mxu0 }
 0x39c   : > { %1783 = vst [vmem:[%s3111_s30 + $0xa0] sm:$0xff] %v1705_v21  ;;  %v1720_v23 = vadd.f32 %v2413_v22, %v3106_v41 }
 0x39d   : > { %v1714_v24 = vpop.f32.mrf.mxu0 }
 0x39e   : > { %1786 = vst [vmem:[%s3111_s30 + $0xb8] sm:$0xff] %v1720_v23  ;;  %v1715_v25 = vadd.f32 %v3106_v41, %v1714_v24 }
 0x39f   : > { %v2416_v26 = vpop.f32.mrf.mxu0 }
 0x3a0   : > { %1785 = vst [vmem:[%s3111_s30 + $0xb0] sm:$0xff] %v1715_v25  ;;  %v1730_v27 = vadd.f32 %v2416_v26, %v3106_v41 }
 0x3a1   : > { %v1724_v28 = vpop.f32.mrf.mxu0 }
 0x3a2   : > { %1788 = vst [vmem:[%s3111_s30 + $0xc8] sm:$0xff] %v1730_v27  ;;  %v1725_v29 = vadd.f32 %v3106_v41, %v1724_v28 }
 0x3a3   : > { %v2419_v30 = vpop.f32.mrf.mxu0 }
 0x3a4   : > { %1787 = vst [vmem:[%s3111_s30 + $0xc0] sm:$0xff] %v1725_v29  ;;  %v1740_v31 = vadd.f32 %v2419_v30, %v3106_v41 }
 0x3a5   : > { %v1734_v57 = vpop.f32.mrf.mxu0 }
 0x3a6   : > { %1790 = vst [vmem:[%s3111_s30 + $0xd8] sm:$0xff] %v1740_v31  ;;  %v1735_v32 = vadd.f32 %v3106_v41, %v1734_v57 }
 0x3a7   : > { %v2422_v33 = vpop.f32.mrf.mxu1 }
 0x3a8   : > { %1789 = vst [vmem:[%s3111_s30 + $0xd0] sm:$0xff] %v1735_v32  ;;  %v1750_v34 = vadd.f32 %v2422_v33, %v3106_v41 }
 0x3a9   : > { %v1744_v35 = vpop.f32.mrf.mxu1 }
 0x3aa   : > { %1792 = vst [vmem:[%s3111_s30 + $0xe8] sm:$0xff] %v1750_v34  ;;  %v1745_v37 = vadd.f32 %v3106_v41, %v1744_v35 }
 0x3ab   : > { %v2425_v38 = vpop.f32.mrf.mxu1 }
 0x3ac   : > { %1791 = vst [vmem:[%s3111_s30 + $0xe0] sm:$0xff] %v1745_v37  ;;  %v1760_v39 = vadd.f32 %v2425_v38, %v3106_v41 }
 0x3ad   : > { %v1754_v40 = vpop.f32.mrf.mxu1 }
 0x3ae   : > { %1794 = vst [vmem:[%s3111_s30 + $0xf8] sm:$0xff] %v1760_v39  ;;  %v1755_v42 = vadd.f32 %v3106_v41, %v1754_v40 }
 0x3b0   : > { %1793 = vst [vmem:[%s3111_s30 + $0xf0] sm:$0xff] %v1755_v42 }
 0x3b1   : > { %2533 = shalt.err (!%p2530_p10)
}
 0x3b2   : > { %s2534_s21 = scalar_lea.hbm %s3178_s20, 4096  ;;  %s2538_s30 = scalar_lea.hbm %s3236_s10, 8192 }
 0x3b3   : > { %p2535_p0 = scmp.ne.s32.totalorder %s3178_s20, %s2534_s21  ;;  %p2539_p1 = scmp.lt.s32.totalorder %s3178_s20, %s3236_s10 }
 0x3b4   : > { %p2540_p3 = scmp.lt.s32.totalorder %s2538_s30, %s2534_s21 }
 0x3b5   : > { %p2536_p2 = pnand %p2535_p0, %p3248_p12 }
 0x3b6   : > { %p2541_p6 = por %p2540_p3, %p2539_p1 }
 0x3b7   : > { %p2537_p9 = pneg %p2536_p2 }
 0x3b9   : > { %p2542_p11 = pnand %p2541_p6, %p2537_p9 }
 0x3bb   : > { %2545 = shalt.err (!%p2542_p11)
}
 0x3bc   : > { %s2590_s19 = smov 128   ;;  %s2591_s0 = smov 8  }
 0x3bd   : > { %2444 = dma.vmem_to_hbm [thread:$0]  (%p3248_p12), %s3180_s17, 4096, %s3178_s20, %s1796_s16, %s2590_s19, %s2590_s19, %s2591_s0  }
 0x3be PF: > { %s1824_s11 = sand.u32 1, %s2572_s12   ;;  %p3249_p13 = scmp.ne.s32.totalorder %s3245_s25, 0 }
 0x3bf   : > { %p3250_p4 = scmp.ge.s32.totalorder %s2584_s15, 2  ;;  %s1825_s26 = scalar_lea.sflag [#allocation5], %s1824_s11 }
 0x3c1   : > { %p2451_p5 = pnand %p3250_p4, %p3249_p13 }
 0x3c3   : > { %p2452_p7 = pneg %p2451_p5 }
 0x3c5   : > { %2567 = dma.done.wait (%p2452_p7), %s1825_s26, 4096  }
 0x3c6   : > { %2569 = vsyncadd (%p2452_p7), %s1825_s26, 4294963200  ;;  %s3251_s23 = sld [smem:[#allocation9_spill]]  ;;  %p24_p8 = scmp.ge.s32.totalorder %s2672_s18, 4  }
 0x3c7   : > { %s3252_s14 = sld [smem:[#allocation10_spill]]  ;;  %s3253_s12 = smov %s2576_s13 }
 0x3c8   : > { %s3255_s15 = smov %s2672_s18  ;;  %26 = sbr.rel (!%p24_p8) target bundleno = 5 (0x5), region = 105 }
 0x3cc   : > { %s3254_s13 = smov %s3251_s23 }
 0x3cd   :  { %1830 = vsyncpa [#allocation4], 1 }
 0x3ce   :  { %1832 = vsyncpa [#allocation4 + $0x1], 1 }
 0x3cf   :  { %1833 = vsyncpa [#allocation5], 1 }
 0x3d0   :  { %1835 = vsyncpa [#allocation5 + $0x1], 1 }

</bundles_post_ra>
